<compile_context>
chip_gen: v7x
topology: tpu7x:2x2x1
jax: 0.10.0
libtpu: 0.0.40
codegen_flags: <defaults>
</compile_context>

<pallas_src>
import numpy as np
import jax
import jax.numpy as jnp
from jax.experimental import pallas as pl
from jax.experimental.pallas import tpu as pltpu

# ------------------------- configuration constants ---------------------------
EMBED = 32
HEADS = 8
HEAD_DIM = EMBED // HEADS
DOWN_RATIO = 4
OUT_DIMS = EMBED // DOWN_RATIO
NUM_CLASSES = 18
OCC_PAD = 32          # occ classes padded to a lane-friendly width inside the kernel

# grid_config -> vox_size = [y, x, z]
GRID_CONFIG = {"x": [-4.0, 4.0, 1.0], "y": [-4.0, 4.0, 1.0], "z": [-2.0, 2.0, 1.0]}
VOX_SIZE = [
    int((GRID_CONFIG["y"][1] - GRID_CONFIG["y"][0]) / GRID_CONFIG["y"][-1]),
    int((GRID_CONFIG["x"][1] - GRID_CONFIG["x"][0]) / GRID_CONFIG["x"][-1]),
    int((GRID_CONFIG["z"][1] - GRID_CONFIG["z"][0]) / GRID_CONFIG["z"][-1]),
]
VOX_RES = [GRID_CONFIG["y"][-1], GRID_CONFIG["x"][-1], GRID_CONFIG["z"][-1]]
VOX_LOWER = [GRID_CONFIG["y"][0], GRID_CONFIG["x"][0], GRID_CONFIG["z"][0]]

# box encoding indices (as in the source repo)
X, Y, Z, W_, L_, H_, SIN, COS = 0, 1, 2, 3, 4, 5, 6, 7
LN_EPS = 1e-5


# ------------------------------ Pallas kernels ---------------------------------
def _layernorm(x, g, b):
    mu = jnp.mean(x, axis=-1, keepdims=True)
    var = jnp.mean((x - mu) ** 2, axis=-1, keepdims=True)
    return (x - mu) * jax.lax.rsqrt(var + LN_EPS) * g + b


def edge_message_kernel(
    x_i_ref, src_ref, qsel_ref,
    n1g_ref, n1b_ref, wq_ref, bq_ref, wkv_ref, bkv_ref, hh2_ref, vsel_ref,
    both_ref,
):
    """Per-edge message: norm1 + fused K|V + Q + logits + exp, packed [exp | v*exp]."""
    C = EMBED
    vsel = vsel_ref[...]                                   # (1, 2C): 0 on K cols, 1 on V cols

    # --- per-unique-query work: norm1 + fused K|V projection + source-zero mask ---
    src_n = _layernorm(src_ref[...], n1g_ref[...], n1b_ref[...])          # (Qp, C) f32
    kv = jnp.dot(src_n.astype(jnp.bfloat16), wkv_ref[...],
                 preferred_element_type=jnp.float32) + bkv_ref[...]        # (Qp, 2C)
    # x_j.sum(-1).bool() mask of the reference message(); fold it into the V half only.
    mask_q = (jnp.sum(src_n, axis=-1, keepdims=True) != 0.0).astype(jnp.float32)
    kv = kv * (1.0 + (mask_q - 1.0) * vsel)

    # --- gather K|V per edge (one-hot matmul); Q projection from per-edge target feats ---
    kv_e = jnp.dot(qsel_ref[...], kv.astype(jnp.bfloat16),
                   preferred_element_type=jnp.float32)                     # (E, 2C)
    q_e = jnp.dot(x_i_ref[...].astype(jnp.bfloat16), wq_ref[...],
                  preferred_element_type=jnp.float32) + bq_ref[...]        # (E, C)
    k_e = kv_e[:, :C]

    # per-head logits broadcast over each head's channels (two copies: K-half / V-half),
    # with 1/sqrt(head_dim) folded into hh2.
    logit = jnp.dot((q_e * k_e).astype(jnp.bfloat16), hh2_ref[...],
                    preferred_element_type=jnp.float32)                    # (E, 2C)
    m = jnp.max(jnp.max(logit, axis=-1, keepdims=True), axis=0, keepdims=True)
    ex = jnp.exp(logit - m)        # global shift: exact (softmax shift-invariant per segment)

    # K half -> plain exp (denominator), V half -> v*exp (numerator).
    both = ex * (kv_e * vsel + (1.0 - vsel))                               # (E, 2C)
    both_ref[...] = both.astype(jnp.bfloat16)


def node_update_kernel(
    vox_ref, s_ref, both_ref,
    wih_ref, whh_ref, bg_ref, wout_ref, bout_ref,
    n3g_ref, n3b_ref, w1_ref, b1_ref, w2_ref, b2_ref, ncg_ref, ncb_ref,
    wdec_ref, bdec_ref, bnsc_ref, bnsh_ref,
    wprojb_ref, bprojb_ref, woccb_ref, boccb_ref,
    vox_out_ref, up_ref, occ_ref,
):
    """Per-voxel tile: segment softmax + gated update + FFN + deconv/proj/occ heads."""
    C = EMBED
    x_t = vox_ref[...]                                                     # (tN, C) f32

    # segment softmax numerator & denominator from ONE streamed scatter matmul
    seg = jnp.dot(s_ref[...], both_ref[...],
                  preferred_element_type=jnp.float32)                      # (tN, 2C)
    agg = seg[:, C:] * pl.reciprocal(seg[:, :C] + 1e-16, approx=True)      # (tN, C)

    # PyG update (gating, fused bias) + out_proj + residual + FFN + norm_cross
    gate = jax.nn.sigmoid(
        jnp.dot(agg.astype(jnp.bfloat16), wih_ref[...], preferred_element_type=jnp.float32)
        + jnp.dot(x_t.astype(jnp.bfloat16), whh_ref[...], preferred_element_type=jnp.float32)
        + bg_ref[...]
    )
    mha = jnp.dot((agg * gate).astype(jnp.bfloat16), wout_ref[...],
                  preferred_element_type=jnp.float32) + bout_ref[...]
    x1 = x_t + mha
    h = _layernorm(x1, n3g_ref[...], n3b_ref[...])
    h = jnp.maximum(jnp.dot(h.astype(jnp.bfloat16), w1_ref[...],
                            preferred_element_type=jnp.float32) + b1_ref[...], 0.0)
    x2 = x1 + jnp.dot(h.astype(jnp.bfloat16), w2_ref[...],
                      preferred_element_type=jnp.float32) + b2_ref[...]
    vox_out = _layernorm(x2, ncg_ref[...], ncb_ref[...])
    vox_out_ref[...] = vox_out                                             # (tN, C)

    # up_block: ConvTranspose3d(2,2,2)/s2 == per-voxel matmul producing 8 packed
    # children along lanes; fused eval-mode BN affine + ReLU
    y = jnp.dot(vox_out.astype(jnp.bfloat16), wdec_ref[...],
                preferred_element_type=jnp.float32) + bdec_ref[...]
    y = jnp.maximum(y * bnsc_ref[...] + bnsh_ref[...], 0.0)                # (tN, 8*OUT_DIMS)

    # proj_layer (1x1x1 conv + ReLU) and vox_occ_net (1x1x1 conv) as block-diagonal
    # matmuls over the packed-child layout (lane-dense 256-wide outputs)
    up = jnp.maximum(
        jnp.dot(y.astype(jnp.bfloat16), wprojb_ref[...],
                preferred_element_type=jnp.float32) + bprojb_ref[...], 0.0)
    up_ref[...] = up                                                       # (tN, 8*EMBED)
    occ_ref[...] = jnp.dot(up.astype(jnp.bfloat16), woccb_ref[...],
                           preferred_element_type=jnp.float32) + boccb_ref[...]


# ------------------------- host-side glue (index build) ----------------------
def box3d_to_corners_np(box3d):
    boxes = np.array(box3d, dtype=np.float32, copy=True)
    boxes[..., 3:6] = np.exp(boxes[..., 3:6])
    g = np.stack(np.meshgrid(np.arange(2), np.arange(2), np.arange(2), indexing="ij"), -1)
    corners_norm = g.reshape(-1, 3)[[0, 1, 3, 2, 4, 5, 7, 6]] - 0.5
    corners = boxes[..., None, [W_, L_, H_]] * corners_norm.reshape(1, 8, 3).astype(np.float32)
    rot = np.tile(np.eye(3, dtype=np.float32), (boxes.shape[0], boxes.shape[1], 1, 1))
    rot[..., 0, 0] = boxes[..., COS]
    rot[..., 0, 1] = -boxes[..., SIN]
    rot[..., 1, 0] = boxes[..., SIN]
    rot[..., 1, 1] = boxes[..., COS]
    corners = np.squeeze(np.matmul(rot[:, :, None], corners[..., None]), -1)
    return corners + boxes[..., None, :3]


def build_edges(agent_pos_np, indices, vox_flatten_size):
    """Data-dependent query->voxel edge construction (box AABB voxel enumeration + unique)."""
    B = agent_pos_np.shape[0]
    vox_indices, query_indices, query_total = [], [], 0
    lower = np.array(VOX_LOWER, np.float32)
    res = np.array(VOX_RES, np.float32)
    for b in range(B):
        corners = box3d_to_corners_np(agent_pos_np[b][indices[b]][None])[0]   # (K, 8, 3)
        vox_pos = np.round((corners - lower) / res)
        min_pos, max_pos = vox_pos.min(axis=1), vox_pos.max(axis=1)
        for d in range(3):
            min_pos[:, d] = np.clip(min_pos[:, d], 0, VOX_SIZE[d] - 1)
            max_pos[:, d] = np.clip(max_pos[:, d], 0, VOX_SIZE[d] - 1)
        for num in range(vox_pos.shape[0]):
            xs = np.arange(min_pos[num, 0], max_pos[num, 0] + 1)
            ys = np.arange(min_pos[num, 1], max_pos[num, 1] + 1)
            zs = np.arange(min_pos[num, 2], max_pos[num, 2] + 1)
            mesh = np.stack(np.meshgrid(xs, ys, zs, indexing="ij"), -1).reshape(-1, 3)
            idx = mesh[..., 1] * VOX_SIZE[1] * VOX_SIZE[2] + mesh[..., 0] * VOX_SIZE[2] + mesh[..., 2]
            idx = np.clip(idx, 0, VOX_SIZE[0] * VOX_SIZE[1] * VOX_SIZE[2] - 1)
            idx = idx + b * vox_flatten_size
            uniq = np.unique(idx).astype(np.int32)
            vox_indices.extend(uniq.tolist())
            query_indices.extend([query_total] * len(uniq))
            query_total += 1
    return np.array(query_indices, np.int32), np.array(vox_indices, np.int32)


# ------------------------------- parameters -----------------------------------
def init_params(key):
    ks = iter(jax.random.split(key, 64))
    nk = lambda: next(ks)
    BF = jnp.bfloat16

    def lin(in_d, out_d, s=0.05):
        w = jax.random.normal(nk(), (in_d, out_d), jnp.float32) * s
        b = jax.random.normal(nk(), (1, out_d), jnp.float32) * 0.01
        return w, b

    p = {}
    # norm1 (applied to agent/source feats). Nonzero beta so the x_j.sum(-1).bool() mask of
    # message() is well defined (not float rounding noise), matching a trained module.
    p["n1_g"] = 1.0 + 0.05 * jax.random.normal(nk(), (1, EMBED), jnp.float32)
    p["n1_b"] = 0.1 + 0.05 * jax.random.normal(nk(), (1, EMBED), jnp.float32)

    wq, bq = lin(EMBED, EMBED)
    p["wq"], p["bq"] = wq.astype(BF), bq
    wk, bk = lin(EMBED, EMBED)
    wv, bv = lin(EMBED, EMBED)
    p["wkv"] = jnp.concatenate([wk, wv], axis=1).astype(BF)   # fused K|V (C, 2C)
    p["bkv"] = jnp.concatenate([bk, bv], axis=1)

    wih, bih = lin(EMBED, EMBED)
    whh, bhh = lin(EMBED, EMBED)
    p["wih"], p["whh"] = wih.astype(BF), whh.astype(BF)
    p["b_gate"] = bih + bhh                                   # fused gate bias
    wout, bout = lin(EMBED, EMBED)
    p["wout"], p["bout"] = wout.astype(BF), bout
    p["n3_g"] = jnp.ones((1, EMBED), jnp.float32)
    p["n3_b"] = jnp.zeros((1, EMBED), jnp.float32)
    w1, b1 = lin(EMBED, EMBED * 4)
    w2, b2 = lin(EMBED * 4, EMBED)
    p["w1"], p["b1"] = w1.astype(BF), b1
    p["w2"], p["b2"] = w2.astype(BF), b2
    p["nc_g"] = jnp.ones((1, EMBED), jnp.float32)
    p["nc_b"] = jnp.zeros((1, EMBED), jnp.float32)

    # per-head sum broadcast to channels (two copies: K half / V half), 1/sqrt(head_dim)
    # folded in (0.5 -> exact in bf16).
    scale = float(HEAD_DIM) ** 0.5
    hh = np.zeros((EMBED, 2 * EMBED), np.float32)
    for c1 in range(EMBED):
        for c2 in range(2 * EMBED):
            if c1 // HEAD_DIM == (c2 % EMBED) // HEAD_DIM:
                hh[c1, c2] = 1.0 / scale
    p["hh2"] = jnp.asarray(hh, dtype=BF)
    vsel = np.zeros((1, 2 * EMBED), np.float32)
    vsel[0, EMBED:] = 1.0
    p["vsel"] = jnp.asarray(vsel)                             # 1 on V columns, 0 on K columns

    # up_block: ConvTranspose3d(EMBED -> OUT_DIMS, k=2, s=2); flattened (EMBED, 8*OUT_DIMS)
    # with child index p = d0*4 + d1*2 + d2 packed along columns; eval-mode BN folded in.
    wdec = jax.random.normal(nk(), (EMBED, 2, 2, 2, OUT_DIMS), jnp.float32) * 0.05
    p["wdec"] = wdec.reshape(EMBED, 8 * OUT_DIMS).astype(BF)
    bdec = jax.random.normal(nk(), (OUT_DIMS,), jnp.float32) * 0.01
    p["bdec"] = jnp.tile(bdec, 8)[None, :]
    gamma = 1.0 + 0.1 * jax.random.normal(nk(), (OUT_DIMS,), jnp.float32)
    beta = 0.1 * jax.random.normal(nk(), (OUT_DIMS,), jnp.float32)
    rmean = 0.1 * jax.random.normal(nk(), (OUT_DIMS,), jnp.float32)
    rvar = 1.0 + 0.1 * jnp.abs(jax.random.normal(nk(), (OUT_DIMS,), jnp.float32))
    bn_scale = gamma / jnp.sqrt(rvar + 1e-5)
    bn_shift = beta - rmean * bn_scale
    p["bn_scale"] = jnp.tile(bn_scale, 8)[None, :]
    p["bn_shift"] = jnp.tile(bn_shift, 8)[None, :]

    # proj_layer / vox_occ_net as block-diagonal 1x1x1 convs over the packed-child layout.
    wproj, bproj = lin(OUT_DIMS, EMBED)                       # (8, 32)
    wocc, bocc = lin(EMBED, NUM_CLASSES)                      # (32, 18)
    wproj_np, bproj_np = np.asarray(wproj), np.asarray(bproj)
    wocc_pad = np.zeros((EMBED, OCC_PAD), np.float32)
    wocc_pad[:, :NUM_CLASSES] = np.asarray(wocc)
    bocc_pad = np.zeros((1, OCC_PAD), np.float32)
    bocc_pad[0, :NUM_CLASSES] = np.asarray(bocc)[0]
    wprojb = np.zeros((8 * OUT_DIMS, 8 * EMBED), np.float32)
    woccb = np.zeros((8 * EMBED, 8 * OCC_PAD), np.float32)
    for pch in range(8):
        wprojb[pch * OUT_DIMS:(pch + 1) * OUT_DIMS, pch * EMBED:(pch + 1) * EMBED] = wproj_np
        woccb[pch * EMBED:(pch + 1) * EMBED, pch * OCC_PAD:(pch + 1) * OCC_PAD] = wocc_pad
    p["wprojb"] = jnp.asarray(wprojb, dtype=BF)
    p["bprojb"] = jnp.asarray(np.tile(bproj_np, (1, 8)))
    p["woccb"] = jnp.asarray(woccb, dtype=BF)
    p["boccb"] = jnp.asarray(np.tile(bocc_pad, (1, 8)))
    return p


# --------------------------------- forward ------------------------------------
def interaction_net_forward(params, agent_feat, vox_feat, agent_pos, indices, tile_n=128):
    B, Hh, Ww, Dd, embed = vox_feat.shape
    N = B * Hh * Ww * Dd
    vox_flat = vox_feat.reshape(N, embed)

    # ---- data-dependent edge construction (host glue, mirrors the PyTorch loop) ----
    q_idx, v_idx = build_edges(np.asarray(agent_pos), indices, Hh * Ww * Dd)
    E = len(v_idx)
    E_pad = max(128, ((E + 127) // 128) * 128)
    valid = np.zeros((E_pad,), np.float32); valid[:E] = 1.0
    q_idx_p = np.zeros((E_pad,), np.int32); q_idx_p[:E] = q_idx
    v_idx_p = np.zeros((E_pad,), np.int32); v_idx_p[:E] = v_idx

    # selected agent (source-query) features, padded to a sublane-friendly row count
    sel_agent = jnp.concatenate(
        [agent_feat[b][np.asarray(indices[b], np.int32)] for b in range(B)], axis=0)
    Q = sel_agent.shape[0]
    Q_pad = max(8, ((Q + 7) // 8) * 8)
    src_p = jnp.zeros((Q_pad, embed), jnp.float32).at[:Q].set(sel_agent)

    # one-hot gather (edge -> query) and scatter (node <- edge, valid folded in); bf16 exact 0/1
    qsel = (np.arange(Q_pad, dtype=np.int32)[None, :] == q_idx_p[:, None]).astype(np.float32)
    S = (np.arange(N, dtype=np.int32)[:, None] == v_idx_p[None, :]).astype(np.float32) * valid[None, :]
    qsel_bf = jnp.asarray(qsel, dtype=jnp.bfloat16)
    S_bf = jnp.asarray(S, dtype=jnp.bfloat16)

    # TODO(synk): gather x_i inside the kernel (scalar-prefetched v_idx + DMA gather) for
    #             production N; host-side take is one small (E,32) XLA gather here.
    x_i_e = jnp.take(vox_flat, jnp.asarray(v_idx_p, jnp.int32), axis=0)

    # ----------------- stage 1: per-edge message kernel (run once) -----------------
    edge_args = (
        x_i_e, src_p, qsel_bf,
        params["n1_g"], params["n1_b"], params["wq"], params["bq"],
        params["wkv"], params["bkv"], params["hh2"], params["vsel"],
    )
    both = pl.pallas_call(
        edge_message_kernel,
        out_shape=jax.ShapeDtypeStruct((E_pad, 2 * embed), jnp.bfloat16),
        in_specs=[pl.BlockSpec(memory_space=pltpu.MemorySpace.VMEM)] * len(edge_args),
        out_specs=pl.BlockSpec(memory_space=pltpu.MemorySpace.VMEM),
    )(*edge_args)

    # ----------------- stage 2: tiled per-voxel kernel (grid over N) ---------------
    tile_n = max(8, (min(tile_n, N) // 8) * 8)
    while N % tile_n != 0:
        tile_n -= 8
    n_tiles = N // tile_n

    # VMEM budget: double-buffered streamed tiles + edge slab + weights; cap for v7x (64 MiB)
    per_tile_bytes = tile_n * (E_pad * 2 + embed * 4            # S (bf16) + vox (f32)
                               + embed * 4 + 8 * embed * 4 + 8 * OCC_PAD * 4)   # outputs
    vmem_limit = int(min(60 * 1024 * 1024,
                         max(16 * 1024 * 1024,
                             2 * per_tile_bytes + E_pad * 2 * embed * 2 + (4 << 20))))

    tiled = lambda i: (i, 0)
    const = lambda i: (0, 0)

    node_args = (
        vox_flat, S_bf, both,
        params["wih"], params["whh"], params["b_gate"], params["wout"], params["bout"],
        params["n3_g"], params["n3_b"], params["w1"], params["b1"],
        params["w2"], params["b2"], params["nc_g"], params["nc_b"],
        params["wdec"], params["bdec"], params["bn_scale"], params["bn_shift"],
        params["wprojb"], params["bprojb"], params["woccb"], params["boccb"],
    )
    in_specs = [
        pl.BlockSpec((tile_n, embed), tiled),       # vox rows (streamed)
        pl.BlockSpec((tile_n, E_pad), tiled),       # S rows (streamed, bf16)
        pl.BlockSpec((E_pad, 2 * embed), const),    # per-edge messages (resident)
    ] + [pl.BlockSpec(a.shape, const) for a in node_args[3:]]   # weights (resident)
    out_shapes = (
        jax.ShapeDtypeStruct((N, embed), jnp.float32),           # vox_with_query (flat)
        jax.ShapeDtypeStruct((N, 8 * embed), jnp.float32),       # up_vox_occ, packed children
        jax.ShapeDtypeStruct((N, 8 * OCC_PAD), jnp.float32),     # vox_occ, packed + padded classes
    )
    out_specs = (
        pl.BlockSpec((tile_n, embed), tiled),
        pl.BlockSpec((tile_n, 8 * embed), tiled),
        pl.BlockSpec((tile_n, 8 * OCC_PAD), tiled),
    )
    vox_out, up_packed, occ_packed = pl.pallas_call(
        node_update_kernel,
        grid=(n_tiles,),
        out_shape=out_shapes,
        in_specs=in_specs,
        out_specs=out_specs,
        compiler_params=pltpu.CompilerParams(
            dimension_semantics=("parallel",),
            vmem_limit_bytes=vmem_limit),
    )(*node_args)

    vox_with_query = vox_out.reshape(B, Hh, Ww, Dd, embed)

    # TODO(synk): at production N these unpack transposes re-read/re-write the largest
    #             tensors in HBM; downstream consumers could accept the packed layout.
    up8 = up_packed.reshape(B, Hh, Ww, Dd, 2, 2, 2, embed)
    up_vox_occ = jnp.transpose(up8, (0, 7, 1, 4, 2, 5, 3, 6)).reshape(
        B, embed, 2 * Hh, 2 * Ww, 2 * Dd)                                  # (B, C, 2H, 2W, 2D)

    occ8 = occ_packed.reshape(B, Hh, Ww, Dd, 2, 2, 2, OCC_PAD)[..., :NUM_CLASSES]
    vox_occ = jnp.transpose(occ8, (0, 7, 2, 5, 1, 4, 3, 6)).reshape(
        B, NUM_CLASSES, 2 * Ww, 2 * Hh, 2 * Dd)        # == (B,NC,2H,2W,2D).permute(0,1,3,2,4)

    return vox_with_query, vox_occ, up_vox_occ


# ----------------------------------- main --------------------------------------
if __name__ == "__main__":
    key = jax.random.PRNGKey(0)
    pkey, ikey = jax.random.split(key)
    params = init_params(pkey)

    B, A = 1, 6
    Hh, Ww, Dd = VOX_SIZE
    iks = iter(jax.random.split(ikey, 8))
    agent_feat = jax.random.normal(next(iks), (B, A, EMBED), jnp.float32)
    vox_feat = jax.random.normal(next(iks), (B, Hh, Ww, Dd, EMBED), jnp.float32)
    xy = jax.random.uniform(next(iks), (B, A, 2), minval=-3.0, maxval=3.0)
    z = jax.random.uniform(next(iks), (B, A, 1), minval=-1.0, maxval=1.0)
    log_wlh = jax.random.uniform(next(iks), (B, A, 3), minval=0.1, maxval=0.5)
    yaw = jax.random.uniform(next(iks), (B, A, 1), minval=-3.14, maxval=3.14)
    agent_pos = jnp.concatenate([xy, z, log_wlh, jnp.sin(yaw), jnp.cos(yaw)], axis=-1)
    indices = [np.array([0, 2, 4])]   # selected agent queries per batch

    outs = interaction_net_forward(params, agent_feat, vox_feat, agent_pos, indices)
    outs = jax.block_until_ready(outs)

    vox_with_query, vox_occ, up_vox_occ = outs
    assert vox_with_query.shape == (B, Hh, Ww, Dd, EMBED)
    assert up_vox_occ.shape == (B, EMBED, 2 * Hh, 2 * Ww, 2 * Dd)
    assert vox_occ.shape == (B, NUM_CLASSES, 2 * Ww, 2 * Hh, 2 * Dd)
    assert all(bool(jnp.all(jnp.isfinite(o))) for o in outs)
    print("KERNEL_OK")
</pallas_src>

<mosaic_0001>
module attributes {stable_mosaic.version = 11 : i64} {
  func.func @edge_message_kernel(%arg0: memref<128x32xf32, #tpu.memory_space<vmem>>, %arg1: memref<8x32xf32, #tpu.memory_space<vmem>>, %arg2: memref<128x8xbf16, #tpu.memory_space<vmem>>, %arg3: memref<1x32xf32, #tpu.memory_space<vmem>>, %arg4: memref<1x32xf32, #tpu.memory_space<vmem>>, %arg5: memref<32x32xbf16, #tpu.memory_space<vmem>>, %arg6: memref<1x32xf32, #tpu.memory_space<vmem>>, %arg7: memref<32x64xbf16, #tpu.memory_space<vmem>>, %arg8: memref<1x64xf32, #tpu.memory_space<vmem>>, %arg9: memref<32x64xbf16, #tpu.memory_space<vmem>>, %arg10: memref<1x64xf32, #tpu.memory_space<vmem>>, %arg11: memref<128x64xbf16, #tpu.memory_space<vmem>>) attributes {dimension_semantics = [], scalar_prefetch = 0 : i64, scratch_operands = 0 : i64, tpu.core_type = #tpu.core_type<tc>} {
    %c0 = arith.constant 0 : index
    %c0_0 = arith.constant 0 : index
    %0 = vector.load %arg10[%c0, %c0_0] : memref<1x64xf32, #tpu.memory_space<vmem>>, vector<1x64xf32>
    %c0_1 = arith.constant 0 : index
    %c0_2 = arith.constant 0 : index
    %1 = vector.load %arg1[%c0_1, %c0_2] : memref<8x32xf32, #tpu.memory_space<vmem>>, vector<8x32xf32>
    %c0_3 = arith.constant 0 : index
    %c0_4 = arith.constant 0 : index
    %2 = vector.load %arg3[%c0_3, %c0_4] : memref<1x32xf32, #tpu.memory_space<vmem>>, vector<1x32xf32>
    %c0_5 = arith.constant 0 : index
    %c0_6 = arith.constant 0 : index
    %3 = vector.load %arg4[%c0_5, %c0_6] : memref<1x32xf32, #tpu.memory_space<vmem>>, vector<1x32xf32>
    %cst = arith.constant dense<0.000000e+00> : vector<8xf32>
    %4 = vector.multi_reduction <add>, %1, %cst [1] : vector<8x32xf32> to vector<8xf32>
    %5 = vector.shape_cast %4 : vector<8xf32> to vector<8x1xf32>
    %cst_7 = arith.constant 3.200000e+01 : f32
    %6 = vector.broadcast %cst_7 : f32 to vector<8x1xf32>
    %7 = arith.divf %5, %6 : vector<8x1xf32>
    %8 = vector.broadcast %7 : vector<8x1xf32> to vector<8x32xf32>
    %9 = arith.subf %1, %8 : vector<8x32xf32>
    %10 = arith.mulf %9, %9 : vector<8x32xf32>
    %cst_8 = arith.constant dense<0.000000e+00> : vector<8xf32>
    %11 = vector.multi_reduction <add>, %10, %cst_8 [1] : vector<8x32xf32> to vector<8xf32>
    %12 = vector.shape_cast %11 : vector<8xf32> to vector<8x1xf32>
    %cst_9 = arith.constant 3.200000e+01 : f32
    %13 = vector.broadcast %cst_9 : f32 to vector<8x1xf32>
    %14 = arith.divf %12, %13 : vector<8x1xf32>
    %15 = vector.broadcast %7 : vector<8x1xf32> to vector<8x32xf32>
    %16 = arith.subf %1, %15 : vector<8x32xf32>
    %cst_10 = arith.constant 9.99999974E-6 : f32
    %17 = vector.broadcast %cst_10 : f32 to vector<8x1xf32>
    %18 = arith.addf %14, %17 : vector<8x1xf32>
    %19 = math.rsqrt %18 : vector<8x1xf32>
    %20 = vector.broadcast %19 : vector<8x1xf32> to vector<8x32xf32>
    %21 = arith.mulf %16, %20 : vector<8x32xf32>
    %22 = vector.broadcast %2 : vector<1x32xf32> to vector<8x32xf32>
    %23 = arith.mulf %21, %22 : vector<8x32xf32>
    %24 = vector.broadcast %3 : vector<1x32xf32> to vector<8x32xf32>
    %25 = arith.addf %23, %24 : vector<8x32xf32>
    %26 = arith.truncf %25 : vector<8x32xf32> to vector<8x32xbf16>
    %c0_11 = arith.constant 0 : index
    %c0_12 = arith.constant 0 : index
    %27 = vector.load %arg7[%c0_11, %c0_12] : memref<32x64xbf16, #tpu.memory_space<vmem>>, vector<32x64xbf16>
    %cst_13 = arith.constant dense<0.000000e+00> : vector<8x64xf32>
    %28 = tpu.matmul %26, %27, %cst_13 {dimension_numbers = #tpu.dot_dimension_numbers<[1], [0], [0], [1], [0, 0, 1, 1], [], []>} : vector<8x32xbf16>, vector<32x64xbf16>, vector<8x64xf32> -> vector<8x64xf32>
    %c0_14 = arith.constant 0 : index
    %c0_15 = arith.constant 0 : index
    %29 = vector.load %arg8[%c0_14, %c0_15] : memref<1x64xf32, #tpu.memory_space<vmem>>, vector<1x64xf32>
    %30 = vector.broadcast %29 : vector<1x64xf32> to vector<8x64xf32>
    %31 = arith.addf %28, %30 : vector<8x64xf32>
    %cst_16 = arith.constant dense<0.000000e+00> : vector<8xf32>
    %32 = vector.multi_reduction <add>, %25, %cst_16 [1] : vector<8x32xf32> to vector<8xf32>
    %33 = vector.shape_cast %32 : vector<8xf32> to vector<8x1xf32>
    %cst_17 = arith.constant 0.000000e+00 : f32
    %34 = vector.broadcast %cst_17 : f32 to vector<8x1xf32>
    %35 = arith.cmpf one, %33, %34 : vector<8x1xf32>
    %36 = arith.extui %35 : vector<8x1xi1> to vector<8x1xi32>
    %37 = arith.sitofp %36 : vector<8x1xi32> to vector<8x1xf32>
    %cst_18 = arith.constant 1.000000e+00 : f32
    %38 = vector.broadcast %cst_18 : f32 to vector<8x1xf32>
    %39 = arith.subf %37, %38 : vector<8x1xf32>
    %40 = vector.broadcast %39 : vector<8x1xf32> to vector<8x64xf32>
    %41 = vector.broadcast %0 : vector<1x64xf32> to vector<8x64xf32>
    %42 = arith.mulf %40, %41 : vector<8x64xf32>
    %cst_19 = arith.constant 1.000000e+00 : f32
    %43 = vector.broadcast %cst_19 : f32 to vector<8x64xf32>
    %44 = arith.addf %43, %42 : vector<8x64xf32>
    %45 = arith.mulf %31, %44 : vector<8x64xf32>
    %c0_20 = arith.constant 0 : index
    %c0_21 = arith.constant 0 : index
    %46 = vector.load %arg2[%c0_20, %c0_21] : memref<128x8xbf16, #tpu.memory_space<vmem>>, vector<128x8xbf16>
    %47 = arith.truncf %45 : vector<8x64xf32> to vector<8x64xbf16>
    %cst_22 = arith.constant dense<0.000000e+00> : vector<128x64xf32>
    %48 = tpu.matmul %46, %47, %cst_22 {dimension_numbers = #tpu.dot_dimension_numbers<[1], [0], [0], [1], [0, 0, 1, 1], [], []>} : vector<128x8xbf16>, vector<8x64xbf16>, vector<128x64xf32> -> vector<128x64xf32>
    %c0_23 = arith.constant 0 : index
    %c0_24 = arith.constant 0 : index
    %49 = vector.load %arg0[%c0_23, %c0_24] : memref<128x32xf32, #tpu.memory_space<vmem>>, vector<128x32xf32>
    %50 = arith.truncf %49 : vector<128x32xf32> to vector<128x32xbf16>
    %c0_25 = arith.constant 0 : index
    %c0_26 = arith.constant 0 : index
    %51 = vector.load %arg5[%c0_25, %c0_26] : memref<32x32xbf16, #tpu.memory_space<vmem>>, vector<32x32xbf16>
    %cst_27 = arith.constant dense<0.000000e+00> : vector<128x32xf32>
    %52 = tpu.matmul %50, %51, %cst_27 {dimension_numbers = #tpu.dot_dimension_numbers<[1], [0], [0], [1], [0, 0, 1, 1], [], []>} : vector<128x32xbf16>, vector<32x32xbf16>, vector<128x32xf32> -> vector<128x32xf32>
    %c0_28 = arith.constant 0 : index
    %c0_29 = arith.constant 0 : index
    %53 = vector.load %arg6[%c0_28, %c0_29] : memref<1x32xf32, #tpu.memory_space<vmem>>, vector<1x32xf32>
    %54 = vector.broadcast %53 : vector<1x32xf32> to vector<128x32xf32>
    %55 = arith.addf %52, %54 : vector<128x32xf32>
    %56 = vector.extract_strided_slice %48 {offsets = [0, 0], sizes = [128, 32], strides = [1, 1]} : vector<128x64xf32> to vector<128x32xf32>
    %57 = arith.mulf %55, %56 : vector<128x32xf32>
    %58 = arith.truncf %57 : vector<128x32xf32> to vector<128x32xbf16>
    %c0_30 = arith.constant 0 : index
    %c0_31 = arith.constant 0 : index
    %59 = vector.load %arg9[%c0_30, %c0_31] : memref<32x64xbf16, #tpu.memory_space<vmem>>, vector<32x64xbf16>
    %cst_32 = arith.constant dense<0.000000e+00> : vector<128x64xf32>
    %60 = tpu.matmul %58, %59, %cst_32 {dimension_numbers = #tpu.dot_dimension_numbers<[1], [0], [0], [1], [0, 0, 1, 1], [], []>} : vector<128x32xbf16>, vector<32x64xbf16>, vector<128x64xf32> -> vector<128x64xf32>
    %cst_33 = arith.constant dense<0xFF800000> : vector<128xf32>
    %61 = vector.multi_reduction <maximumf>, %60, %cst_33 [1] : vector<128x64xf32> to vector<128xf32>
    %62 = vector.shape_cast %61 : vector<128xf32> to vector<128x1xf32>
    %cst_34 = arith.constant dense<0xFF800000> : vector<1xf32>
    %63 = vector.multi_reduction <maximumf>, %62, %cst_34 [0] : vector<128x1xf32> to vector<1xf32>
    %64 = vector.shape_cast %63 : vector<1xf32> to vector<1x1xf32>
    %65 = vector.broadcast %64 : vector<1x1xf32> to vector<128x64xf32>
    %66 = arith.subf %60, %65 : vector<128x64xf32>
    %67 = math.exp %66 : vector<128x64xf32>
    %68 = vector.broadcast %0 : vector<1x64xf32> to vector<128x64xf32>
    %69 = arith.mulf %48, %68 : vector<128x64xf32>
    %cst_35 = arith.constant 1.000000e+00 : f32
    %70 = vector.broadcast %cst_35 : f32 to vector<1x64xf32>
    %71 = arith.subf %70, %0 : vector<1x64xf32>
    %72 = vector.broadcast %71 : vector<1x64xf32> to vector<128x64xf32>
    %73 = arith.addf %69, %72 : vector<128x64xf32>
    %74 = arith.mulf %67, %73 : vector<128x64xf32>
    %75 = arith.truncf %74 : vector<128x64xf32> to vector<128x64xbf16>
    %c0_36 = arith.constant 0 : index
    %c0_37 = arith.constant 0 : index
    %76 = vector.load %arg11[%c0_36, %c0_37] : memref<128x64xbf16, #tpu.memory_space<vmem>>, vector<128x64xbf16>
    tpu.vector_store %arg11[%c0_36, %c0_37], %75 {strides = array<i32>} : memref<128x64xbf16, #tpu.memory_space<vmem>>, vector<128x64xbf16>,
    return
  }
}

</mosaic_0001>

<bundles_post_ra>
// kernel: tpu_custom_call.1
= control target key start
LH: loop header
LB: loop body
LE: loop exit
PB: predicated region body
PF: predicated region fallthrough
CT: control target
= control target key end

     0   :  { %vm43_vm0 = vcmask 261120   ;;  %v1154_v7 = vmov 0.0   ;;  %vm1155_vm1 = vmmov 0   ;;  %vm212_vm2 = vcmask 64512   ;;  %s1626_s1 = inlined_call_operand.vmem [shape: f32[8,32], index: 1, kind: input, shape index: {}]   ;;  %s1627_s7 = inlined_call_operand.vmem [shape: bf16[32,64], index: 7, kind: input, shape index: {}]   ;;  %s1628_s3 = inlined_call_operand.vmem [shape: f32[1,32], index: 3, kind: input, shape index: {}]   ;;  %s1629_s4 = inlined_call_operand.vmem [shape: f32[1,32], index: 4, kind: input, shape index: {}]   ;;  %s1630_s2 = inlined_call_operand.vmem [shape: bf16[128,8], index: 2, kind: input, shape index: {}]   ;;  %s1631_s5 = inlined_call_operand.vmem [shape: bf16[32,32], index: 5, kind: input, shape index: {}]   ;;  %s1632_s9 = inlined_call_operand.vmem [shape: bf16[32,64], index: 9, kind: input, shape index: {}]   ;;  %s1633_s10 = inlined_call_operand.vmem [shape: f32[1,64], index: 10, kind: input, shape index: {}]   ;;  %s1634_s8 = inlined_call_operand.vmem [shape: f32[1,64], index: 8, kind: input, shape index: {}]   ;;  %s1635_s0 = inlined_call_operand.vmem [shape: f32[128,32], index: 0, kind: input, shape index: {}]   ;;  %s1636_s6 = inlined_call_operand.vmem [shape: f32[1,32], index: 6, kind: input, shape index: {}]   ;;  %s1637_s11 = inlined_call_operand.vmem [shape: bf16[128,64], index: 11, kind: output, shape index: {}]  }
   0x1   :  { %v40_v0 = vld [vmem:[%s1626_s1] sm:$0xff]  ;;  %1034 = vmatprep.subr.bf16.mxu0 %v1154_v7  ;;  %1038 = vmatprep.mubr.msk.bf16.mxu0 %vm1155_vm1, %v1154_v7  ;;  %v1107_v9 = vld [vmem:[%s1627_s7 + $0x8] sm:$0xff]   ;;  %v1112_v22 = vld [vmem:[%s1630_s2 + $0x10] sm:$0xff]   ;;  %v147_v23 = vlaneseq  ;;  %vm237_vm4 = vcmask 1043456   ;;  %vm667_vm5 = vcmask 523264   ;;  %vm904_vm6 = vcmask 519168  }
   0x2   :  { %v44_v1 = vsel %vm43_vm0, %v40_v0, 0.0  ;;  %v1106_v8 = vld [vmem:[%s1627_s7] sm:$0xff]   ;;  %1048 = vmatprep.mubr.msk.bf16.mxu1 %vm212_vm2, %v1112_v22  ;;  %v339_v43 = vld [vmem:[%s1635_s0 + $0x8] sm:$0xff]  ;;  %v1113_v47 = vld [vmem:[%s1630_s2 + $0x18] sm:$0xff]  }
   0x3   :  { %45 = vadd.xlane.f32.xlu0 %v44_v1  ;;  %1035 = vmatpush3.bf16.msra.mxu0 %v1106_v8  ;;  %v925_v14 = vld [vmem:[%s1628_s3] ss:$0 sm:$0xff]  ;;  %v1243_v25 = vshrl.u32 %v147_v23, 7  ;;  %v1109_v46 = vld [vmem:[%s1630_s2 + $0x8] sm:$0xff]   ;;  %v340_v51 = vld [vmem:[%s1635_s0 + $0x10] sm:$0xff] }
   0x4   :  { %1036 = vmatprep.subr.bf16.mxu0 %v1154_v7  ;;  %v926_v16 = vld [vmem:[%s1629_s4] ss:$0 sm:$0xff]  ;;  %v1111_v49 = vld [vmem:[%s1631_s5 + $0x8] sm:$0xff]   ;;  %v341_v52 = vld [vmem:[%s1635_s0 + $0x18] sm:$0xff] }
   0x5   :  { %v1108_v21 = vld [vmem:[%s1630_s2] sm:$0xff]   ;;  %v1638_v26 = vsub.s32 0, %v1243_v25  ;;  %v343_v54 = vld [vmem:[%s1635_s0 + $0x28] sm:$0xff]  ;;  %v355_v55 = vpack.c.bf16 %v341_v52, %v340_v51  ;;  %v1116_v58 = vld [vmem:[%s1630_s2 + $0x30] sm:$0xff]  }
   0x6   :  { %v1249_v27 = vld [vmem:[%s1633_s10] sm:$0x1]  ;;  %v1115_v56 = vld [vmem:[%s1630_s2 + $0x28] sm:$0xff]   ;;  %v344_v59 = vld [vmem:[%s1635_s0 + $0x30] sm:$0xff] }
   0x7   :  { %1037 = vmatpush3.bf16.msra.mxu0 %v1107_v9  ;;  %v1254_v29 = vrot.slane %v1249_v27, %v1638_v26  ;;  %v927_v32 = vld [vmem:[%s1634_s8] ss:$0 sm:$0xff]  ;;  %v345_v60 = vld [vmem:[%s1635_s0 + $0x38] sm:$0xff]  ;;  %v347_v62 = vld [vmem:[%s1635_s0 + $0x48] sm:$0xff] }
   0x8   :  { %v1110_v40 = vld [vmem:[%s1631_s5] sm:$0xff]   ;;  %v357_v63 = vpack.c.bf16 %v345_v60, %v344_v59  ;;  %v352_v8 = vld [vmem:[%s1635_s0 + $0x70] sm:$0xff]  ;;  %v353_v9 = vld [vmem:[%s1635_s0 + $0x78] sm:$0xff] }
   0x9   :  { %v338_v42 = vld [vmem:[%s1635_s0] sm:$0xff] }
   0xa   :  { %v1118_v44 = vld [vmem:[%s1632_s9] sm:$0xff]   ;;  %v354_v48 = vpack.c.bf16 %v339_v43, %v338_v42 }
   0xb   :  { %v1114_v50 = vld [vmem:[%s1630_s2 + $0x20] sm:$0xff]  }
   0xc   :  { %v342_v53 = vld [vmem:[%s1635_s0 + $0x20] sm:$0xff] }
   0xd   :  { %v356_v57 = vpack.c.bf16 %v343_v54, %v342_v53  ;;  %v346_v61 = vld [vmem:[%s1635_s0 + $0x40] sm:$0xff] }
   0xe   :  { %v358_v1 = vpack.c.bf16 %v347_v62, %v346_v61 }
  0x90   :  { %v46_v2 = vpop.xlane.xlu0 %45 }
  0x91   :  { %v48_v3 = vmul.f32 0.03125, %v46_v2  ;;  %v348_v2 = vld [vmem:[%s1635_s0 + $0x50] sm:$0xff] }
  0x93   :  { %v49_v4 = vsub.f32 %v40_v0, %v48_v3  ;;  %v1117_v0 = vld [vmem:[%s1630_s2 + $0x38] sm:$0xff]  }
  0x94   :  { %v349_v3 = vld [vmem:[%s1635_s0 + $0x58] sm:$0xff] }
  0x95   :  { %v50_v5 = vmul.f32 %v49_v4, %v49_v4 }
  0x97   :  { %v51_v6 = vsel %vm43_vm0, %v50_v5, 0.0  ;;  %v351_v5 = vld [vmem:[%s1635_s0 + $0x68] sm:$0xff] }
  0x98   :  { %52 = vadd.xlane.f32.xlu0 %v51_v6  ;;  %v359_v6 = vpack.c.bf16 %v349_v3, %v348_v2 }
 0x125   :  { %v53_v10 = vpop.xlane.xlu0 %52 }
 0x126   :  { %v54_v11 = vmul.f32 0.03125, %v53_v10  ;;  %v361_v10 = vpack.c.bf16 %v353_v9, %v352_v8 }
 0x128   :  { %v55_v12 = vadd.f32 1e-05, %v54_v11  ;;  %v1119_v11 = vld [vmem:[%s1632_s9 + $0x8] sm:$0xff]  }
 0x12a   :  { %1120 = vrsqrt.f32 %v55_v12 }
 0x134   :  { %v1121_v13 = vpop.eup %1120 }
 0x135   :  { %v57_v15 = vmul.f32 %v1121_v13, %v49_v4  ;;  %v350_v4 = vld [vmem:[%s1635_s0 + $0x60] sm:$0xff] }
 0x137   :  { %v64_v17 = vmul.f32 %v925_v14, %v57_v15 }
 0x139   :  { %v71_v18 = vadd.f32 %v926_v16, %v64_v17 }
 0x13b   :  { %v139_v19 = vsel %vm43_vm0, %v71_v18, 0.0  ;;  %v72_v20 = vpack.c.bf16 %v71_v18, %v71_v18 }
 0x13c   :  { %140 = vadd.xlane.f32.xlu1 %v139_v19 }
 0x13d   :  { %1039 = vmatmul.mubr.msk.bf16.vlgmr.msra.gmra.mrb[0].mxu0 %vm43_vm0, %v72_v20  ;;  %v1371_v20 = vld [vmem:[%s1636_s6] ss:$0 sm:$0xff] }
 0x13e   :  { %1044 = vmatprep.mubr.msk.bf16.mxu0 %vm212_vm2, %v1108_v21 }
 0x1c9   :  { %v141_v24 = vpop.xlane.xlu1 %140 }
 0x1ca   :  { %vm142_vm3 = vcmp.ne.f32.partialorder %v141_v24, 0.0 }
 0x1cb   :  { %v931_v28 = vsel %vm142_vm3, 1.0, %v1154_v7  ;;  %v360_v7 = vpack.c.bf16 %v351_v5, %v350_v4 }
 0x1cc   :  { %v932_v30 = vadd.f32 -1.0, %v931_v28 }
 0x1ce   :  { %v152_v31 = vmul.f32 %v932_v30, %v1254_v29 }
 0x1d0   :  { %v153_v34 = vadd.f32 1.0, %v152_v31 }
 0x210   :  { %v133_v33 = vpop.f32.mrb[0].mxu0 }
 0x211   :  { %v134_v35 = vadd.f32 %v927_v32, %v133_v33  ;;  %v1040_v36 = vpop.f32.mrb[1].mxu0 }
 0x212   :  { %v136_v37 = vpop.f32.mrb[2].mxu0 }
 0x213   :  { %v154_v38 = vmul.f32 %v153_v34, %v134_v35  ;;  %v1041_v39 = vpop.f32.mrb[3].mxu0 }
 0x215   :  { %v171_v41 = vpack.c.bf16 %v154_v38, %v154_v38 }
 0x217   :  { %1102 = vmatprep.subr.msk.bf16.mxu0 %vm237_vm4, %v171_v41  ;;  %1103 = vmatprep.subr.msk.bf16.mxu1 %vm237_vm4, %v171_v41  ;;  %v239_v45 = vsel %vm237_vm4, %v171_v41, 0 }
 0x218   :  { %1043 = vmatpush3.bf16.msra.mxu0 %v239_v45  ;;  %1101 = vmatpush3.bf16.msra.mxu1 %v239_v45 }
 0x219   :  { %1060 = vmatprep.subr.bf16.mxu0 %v1110_v40  ;;  %1080 = vmatprep.subr.bf16.mxu1 %v1118_v44 }
 0x21b   :  { %1045 = vmatmul.mubr.msk.bf16.vlgmr.msra.gmra.mrb[4].mxu0 %vm212_vm2, %v1109_v46  ;;  %1049 = vmatmul.mubr.msk.bf16.vlgmr.msra.gmra.mrb[0].mxu1 %vm212_vm2, %v1113_v47 }
 0x21c   :  { %1061 = vmatpush3.bf16.msra.mxu0 %v1110_v40  ;;  %1064 = vmatprep.mubr.msk.bf16.mxu0 %vm43_vm0, %v354_v48 }
 0x21d   :  { %1062 = vmatprep.subr.bf16.mxu0 %v1111_v49  ;;  %1052 = vmatprep.mubr.msk.bf16.mxu1 %vm212_vm2, %v1114_v50 }
 0x21e   :  { %1081 = vmatpush3.bf16.msra.mxu1 %v1118_v44 }
 0x21f   :  { %1082 = vmatprep.subr.bf16.mxu1 %v1119_v11 }
 0x220   :  { %1063 = vmatpush3.bf16.msra.mxu0 %v1111_v49 }
 0x222   :  { %1083 = vmatpush3.bf16.msra.mxu1 %v1119_v11 }
 0x223   :  { %1065 = vmatmul.mubr.msk.bf16.vlgmr.msra.gmra.mrb[8].mxu0 %vm43_vm0, %v355_v55  ;;  %1053 = vmatmul.mubr.msk.bf16.gmra.mrb[4].mxu1 %vm212_vm2, %v1115_v56 }
 0x224   :  { %1068 = vmatprep.mubr.msk.bf16.mxu0 %vm43_vm0, %v356_v57  ;;  %1056 = vmatprep.mubr.msk.bf16.mxu1 %vm212_vm2, %v1116_v58 }
 0x22b   :  { %1069 = vmatmul.mubr.msk.bf16.gmra.mrb[12].mxu0 %vm43_vm0, %v357_v63  ;;  %1057 = vmatmul.mubr.msk.bf16.gmra.mrb[8].mxu1 %vm212_vm2, %v1117_v0 }
 0x22c   :  { %1072 = vmatprep.mubr.msk.bf16.mxu0 %vm43_vm0, %v358_v1 }
 0x233   :  { %1073 = vmatmul.mubr.msk.bf16.gmra.mrb[16].mxu0 %vm43_vm0, %v359_v6 }
 0x234   :  { %1076 = vmatprep.mubr.msk.bf16.mxu0 %vm43_vm0, %v360_v7 }
 0x23b   :  { %1077 = vmatmul.mubr.msk.bf16.gmra.mrb[20].mxu0 %vm43_vm0, %v361_v10 }
 0x2ee   :  { %v1352_v12 = vpop.f32.mrb[4].mxu0  ;;  %v1354_v13 = vpop.f32.mrb[0].mxu1 }
 0x2ef   :  { %v1356_v14 = vpop.f32.mrb[5].mxu0  ;;  %v1358_v15 = vpop.f32.mrb[1].mxu1 }
 0x2f0   :  { %v1360_v16 = vpop.f32.mrb[6].mxu0  ;;  %v1362_v17 = vpop.f32.mrb[2].mxu1 }
 0x2f1   :  { %v1364_v18 = vpop.f32.mrb[7].mxu0  ;;  %v1366_v19 = vpop.f32.mrb[3].mxu1 }
 0x2f6   :  { %v1066_v21 = vpop.f32.mrb[8].mxu0  ;;  %v1373_v22 = vpop.f32.mrb[4].mxu1 }
 0x2f7   :  { %v452_v23 = vadd.f32 %v1066_v21, %v1371_v20  ;;  %v443_v24 = vpop.f32.mrb[9].mxu0  ;;  %v1376_v28 = vpop.f32.mrb[5].mxu1 }
 0x2f8   :  { %v444_v30 = vadd.f32 %v1371_v20, %v443_v24  ;;  %v1067_v31 = vpop.f32.mrb[10].mxu0  ;;  %v1379_v32 = vpop.f32.mrb[6].mxu1 }
 0x2f9   :  { %v508_v33 = vmul.f32 %v1352_v12, %v452_v23  ;;  %v455_v34 = vadd.f32 %v1067_v31, %v1371_v20  ;;  %v446_v35 = vpop.f32.mrb[11].mxu0  ;;  %v1383_v36 = vpop.f32.mrb[7].mxu1 }
 0x2fa   :  { %v506_v37 = vmul.f32 %v444_v30, %v1356_v14  ;;  %v447_v38 = vadd.f32 %v1371_v20, %v446_v35 }
 0x2fb   :  { %v509_v39 = vmul.f32 %v1360_v16, %v455_v34 }
 0x2fc   :  { %v507_v40 = vmul.f32 %v447_v38, %v1364_v18 }
 0x2fd   :  { %v523_v41 = vpack.c.bf16 %v509_v39, %v508_v33 }
 0x2fe   :  { %v522_v42 = vpack.c.bf16 %v507_v40, %v506_v37  ;;  %v1070_v43 = vpop.f32.mrb[12].mxu0  ;;  %v1389_v44 = vpop.f32.mrb[8].mxu1 }
 0x2ff   :  { %1643 = vst [vmem:[#allocation2_spill] sm:$0xff] %v1389_v44  ;;  %v468_v45 = vadd.f32 %v1070_v43, %v1371_v20  ;;  %v459_v46 = vpop.f32.mrb[13].mxu0  ;;  %v1392_v47 = vpop.f32.mrb[9].mxu1 }
 0x300   :  { %1644 = vst [vmem:[#allocation3_spill] sm:$0xff] %v1392_v47  ;;  %v460_v48 = vadd.f32 %v1371_v20, %v459_v46  ;;  %v1071_v49 = vpop.f32.mrb[14].mxu0  ;;  %1084 = vmatprep.mubr.msk.bf16.mxu1 %vm43_vm0, %v522_v42  ;;  %v1396_v50 = vpop.f32.mrb[10].mxu1 }
 0x301   :  { %1645 = vst [vmem:[#allocation4_spill] sm:$0xff] %v1396_v50  ;;  %v512_v51 = vmul.f32 %v1354_v13, %v468_v45  ;;  %v471_v52 = vadd.f32 %v1071_v49, %v1371_v20  ;;  %v462_v53 = vpop.f32.mrb[15].mxu0  ;;  %1085 = vmatmul.mubr.msk.bf16.vlgmr.msra.gmra.mrb[12].mxu1 %vm43_vm0, %v523_v41  ;;  %v1401_v54 = vpop.f32.mrb[11].mxu1 }
 0x302   :  { %1646 = vst [vmem:[#allocation5_spill] sm:$0xff] %v1401_v54  ;;  %v510_v55 = vmul.f32 %v460_v48, %v1358_v15  ;;  %v463_v56 = vadd.f32 %v1371_v20, %v462_v53 }
 0x303   :  { %v513_v57 = vmul.f32 %v1362_v17, %v471_v52 }
 0x304   :  { %v511_v58 = vmul.f32 %v463_v56, %v1366_v19 }
 0x305   :  { %v525_v59 = vpack.c.bf16 %v513_v57, %v512_v51 }
 0x306   :  { %v524_v60 = vpack.c.bf16 %v511_v58, %v510_v55  ;;  %v1074_v61 = vpop.f32.mrb[16].mxu0 }
 0x307   :  { %v484_v62 = vadd.f32 %v1074_v61, %v1371_v20  ;;  %v475_v63 = vpop.f32.mrb[17].mxu0 }
 0x308   :  { %v476_v0 = vadd.f32 %v1371_v20, %v475_v63  ;;  %v1075_v1 = vpop.f32.mrb[18].mxu0  ;;  %1088 = vmatprep.mubr.msk.bf16.mxu1 %vm43_vm0, %v524_v60 }
 0x309   :  { %v516_v2 = vmul.f32 %v1373_v22, %v484_v62  ;;  %v487_v3 = vadd.f32 %v1075_v1, %v1371_v20  ;;  %v478_v4 = vpop.f32.mrb[19].mxu0  ;;  %1089 = vmatmul.mubr.msk.bf16.gmra.mrb[16].mxu1 %vm43_vm0, %v525_v59 }
 0x30a   :  { %v514_v5 = vmul.f32 %v476_v0, %v1376_v28  ;;  %v479_v6 = vadd.f32 %v1371_v20, %v478_v4 }
 0x30b   :  { %v517_v7 = vmul.f32 %v1379_v32, %v487_v3 }
 0x30c   :  { %v515_v8 = vmul.f32 %v479_v6, %v1383_v36 }
 0x30d   :  { %v527_v9 = vpack.c.bf16 %v517_v7, %v516_v2 }
 0x30e   :  { %v526_v10 = vpack.c.bf16 %v515_v8, %v514_v5  ;;  %v1078_v11 = vpop.f32.mrb[20].mxu0 }
 0x30f   :  { %v500_v21 = vadd.f32 %v1078_v11, %v1371_v20  ;;  %v491_v23 = vpop.f32.mrb[21].mxu0 }
 0x310   :  { %v492_v24 = vadd.f32 %v1371_v20, %v491_v23  ;;  %v1079_v30 = vpop.f32.mrb[22].mxu0  ;;  %1092 = vmatprep.mubr.msk.bf16.mxu1 %vm43_vm0, %v526_v10 }
 0x311   :  { %v520_v31 = vmul.f32 %v1389_v44, %v500_v21  ;;  %v503_v33 = vadd.f32 %v1079_v30, %v1371_v20  ;;  %v494_v34 = vpop.f32.mrb[23].mxu0  ;;  %1093 = vmatmul.mubr.msk.bf16.gmra.mrb[20].mxu1 %vm43_vm0, %v527_v9 }
 0x312   :  { %v518_v35 = vmul.f32 %v492_v24, %v1392_v47  ;;  %v495_v37 = vadd.f32 %v1371_v20, %v494_v34 }
 0x313   :  { %v521_v38 = vmul.f32 %v1396_v50, %v503_v33 }
 0x314   :  { %v519_v39 = vmul.f32 %v495_v37, %v1401_v54 }
 0x315   :  { %v529_v40 = vpack.c.bf16 %v521_v38, %v520_v31 }
 0x316   :  { %v528_v41 = vpack.c.bf16 %v519_v39, %v518_v35 }
 0x318   :  { %1096 = vmatprep.mubr.msk.bf16.mxu1 %vm43_vm0, %v528_v41 }
 0x319   :  { %1097 = vmatmul.mubr.msk.bf16.gmra.mrb[24].mxu1 %vm43_vm0, %v529_v40 }
 0x3d4   :  { %v1429_v42 = vpop.f32.mrb[12].mxu1 }
 0x3d5   :  { %v1431_v43 = vpop.f32.mrb[13].mxu1  ;;  %v674_v45 = vsel %vm667_vm5, %v1429_v42, -inf }
 0x3d6   :  { %675 = vmax.xlane.f32.xlu1 %v674_v45  ;;  %v1435_v20 = vpop.f32.mrb[14].mxu1  ;;  %v668_v49 = vsel %vm667_vm5, %v1431_v43, -inf }
 0x3d7   :  { %v1437_v46 = vpop.f32.mrb[15].mxu1  ;;  %v677_v48 = vsel %vm667_vm5, %v1435_v20, -inf }
 0x3d8   :  { %678 = vmax.xlane.f32.xlu0 %v677_v48  ;;  %v671_v51 = vsel %vm667_vm5, %v1437_v46, -inf }
 0x3da   :  { %669 = vmax.xlane.f32.xlu1 %v668_v49 }
 0x3dc   :  { %672 = vmax.xlane.f32.xlu0 %v671_v51  ;;  %v1445_v52 = vpop.f32.mrb[16].mxu1 }
 0x3dd   :  { %v1447_v53 = vpop.f32.mrb[17].mxu1  ;;  %v686_v55 = vsel %vm667_vm5, %v1445_v52, -inf }
 0x3de   :  { %687 = vmax.xlane.f32.xlu1 %v686_v55  ;;  %v1451_v56 = vpop.f32.mrb[18].mxu1  ;;  %v680_v59 = vsel %vm667_vm5, %v1447_v53, -inf }
 0x3df   :  { %v1453_v57 = vpop.f32.mrb[19].mxu1  ;;  %v689_v58 = vsel %vm667_vm5, %v1451_v56, -inf }
 0x3e0   :  { %690 = vmax.xlane.f32.xlu0 %v689_v58  ;;  %v683_v60 = vsel %vm667_vm5, %v1453_v57, -inf }
 0x3e2   :  { %681 = vmax.xlane.f32.xlu1 %v680_v59 }
 0x3e4   :  { %684 = vmax.xlane.f32.xlu0 %v683_v60  ;;  %v1461_v61 = vpop.f32.mrb[20].mxu1 }
 0x3e5   :  { %v1463_v62 = vpop.f32.mrb[21].mxu1  ;;  %v698_v63 = vsel %vm667_vm5, %v1461_v61, -inf }
 0x3e6   :  { %699 = vmax.xlane.f32.xlu1 %v698_v63  ;;  %v1467_v0 = vpop.f32.mrb[22].mxu1  ;;  %v692_v3 = vsel %vm667_vm5, %v1463_v62, -inf }
 0x3e7   :  { %v1469_v1 = vpop.f32.mrb[23].mxu1  ;;  %v701_v2 = vsel %vm667_vm5, %v1467_v0, -inf }
 0x3e8   :  { %702 = vmax.xlane.f32.xlu0 %v701_v2  ;;  %v695_v4 = vsel %vm667_vm5, %v1469_v1, -inf }
 0x3ea   :  { %693 = vmax.xlane.f32.xlu1 %v692_v3 }
 0x3ec   :  { %696 = vmax.xlane.f32.xlu0 %v695_v4  ;;  %v1477_v5 = vpop.f32.mrb[24].mxu1 }
 0x3ed   :  { %v1479_v6 = vpop.f32.mrb[25].mxu1  ;;  %v710_v11 = vsel %vm667_vm5, %v1477_v5, -inf }
 0x3ee   :  { %v1481_v7 = vpop.f32.mrb[26].mxu1  ;;  %v704_v8 = vsel %vm667_vm5, %v1479_v6, -inf }
 0x3ef   :  { %705 = vmax.xlane.f32.xlu1 %v704_v8  ;;  %v1485_v9 = vpop.f32.mrb[27].mxu1  ;;  %v713_v21 = vsel %vm667_vm5, %v1481_v7, -inf }
 0x3f0   :  { %v707_v10 = vsel %vm667_vm5, %v1485_v9, -inf }
 0x3f1   :  { %708 = vmax.xlane.f32.xlu0 %v707_v10 }
 0x3f3   :  { %711 = vmax.xlane.f32.xlu1 %v710_v11 }
 0x3f5   :  { %714 = vmax.xlane.f32.xlu0 %v713_v21 }
 0x463   :  { %v676_v23 = vpop.xlane.xlu1 %675 }
 0x465   :  { %v679_v24 = vpop.xlane.xlu0 %678 }
 0x467   :  { %v670_v30 = vpop.xlane.xlu1 %669 }
 0x469   :  { %v673_v31 = vpop.xlane.xlu0 %672 }
 0x46b   :  { %v688_v33 = vpop.xlane.xlu1 %687 }
 0x46c   :  { %v718_v51 = vmax.f32 %v676_v23, %v688_v33 }
 0x46d   :  { %v691_v34 = vpop.xlane.xlu0 %690 }
 0x46e   :  { %v719_v55 = vmax.f32 %v679_v24, %v691_v34 }
 0x46f   :  { %v682_v35 = vpop.xlane.xlu1 %681 }
 0x470   :  { %v716_v58 = vmax.f32 %v670_v30, %v682_v35 }
 0x471   :  { %v685_v37 = vpop.xlane.xlu0 %684 }
 0x472   :  { %v717_v48 = vmax.f32 %v673_v31, %v685_v37 }
 0x473   :  { %v700_v38 = vpop.xlane.xlu1 %699 }
 0x474   :  { %v722_v63 = vmax.f32 %v718_v51, %v700_v38  ;;  %v801_v38 = vsub.f32 1.0, %v1249_v27 }
 0x475   :  { %v703_v39 = vpop.xlane.xlu0 %702 }
 0x476   :  { %v723_v2 = vmax.f32 %v719_v55, %v703_v39 }
 0x477   :  { %v694_v40 = vpop.xlane.xlu1 %693 }
 0x478   :  { %v720_v3 = vmax.f32 %v716_v58, %v694_v40 }
 0x479   :  { %v697_v41 = vpop.xlane.xlu0 %696 }
 0x47a   :  { %v721_v59 = vmax.f32 %v717_v48, %v697_v41 }
 0x47c   :  { %v706_v45 = vpop.xlane.xlu1 %705 }
 0x47d   :  { %v724_v10 = vmax.f32 %v720_v3, %v706_v45  ;;  %v785_v45 = vmul.f32 %v1356_v14, %v1254_v29  ;;  %v786_v14 = vmul.f32 %v1364_v18, %v1254_v29 }
 0x47e   :  { %v709_v49 = vpop.xlane.xlu0 %708 }
 0x47f   :  { %v725_v4 = vmax.f32 %v721_v59, %v709_v49 }
 0x480   :  { %v712_v60 = vpop.xlane.xlu1 %711 }
 0x481   :  { %v726_v11 = vmax.f32 %v722_v63, %v712_v60  ;;  %v728_v26 = vmax.f32 %v724_v10, %v725_v4 }
 0x482   :  { %v715_v8 = vpop.xlane.xlu0 %714 }
 0x483   :  { %v727_v21 = vmax.f32 %v723_v2, %v715_v8 }
 0x485   :  { %v729_v50 = vmax.f32 %v726_v11, %v727_v21 }
 0x487   :  { %v730_v44 = vmax.f32 %v728_v26, %v729_v50 }
 0x489   :  { %v731_v54 = vrot.slane %v730_v44, 4 }
 0x48b   :  { %v732_v47 = vmax.f32 %v730_v44, %v731_v54 }
 0x48d   :  { %v733_v31 = vrot.slane %v732_v47, 2 }
 0x48f   :  { %v734_v37 = vmax.f32 %v732_v47, %v733_v31 }
 0x491   :  { %v735_v23 = vrot.slane %v734_v37, 1 }
 0x493   :  { %v736_v24 = vmax.f32 %v734_v37, %v735_v23  ;;  %v793_v37 = vmul.f32 %v1376_v28, %v1254_v29 }
 0x495   :  { %v737_v30 = vsub.f32 %v1431_v43, %v736_v24  ;;  %v738_v33 = vsub.f32 %v1437_v46, %v736_v24  ;;  %v739_v34 = vsub.f32 %v1429_v42, %v736_v24  ;;  %v740_v35 = vsub.f32 %v1435_v20, %v736_v24 }
 0x496   :  { %v741_v39 = vsub.f32 %v1447_v53, %v736_v24  ;;  %v742_v26 = vsub.f32 %v1453_v57, %v736_v24  ;;  %v743_v44 = vsub.f32 %v1445_v52, %v736_v24  ;;  %v744_v40 = vsub.f32 %v1451_v56, %v736_v24 }
 0x497   :  { %v753_v50 = vmul.f32 1.442695, %v737_v30  ;;  %v755_v47 = vmul.f32 1.442695, %v738_v33  ;;  %v757_v54 = vmul.f32 1.442695, %v739_v34  ;;  %v745_v42 = vsub.f32 %v1463_v62, %v736_v24 }
 0x498   :  { %v759_v43 = vmul.f32 1.442695, %v740_v35  ;;  %v1647_v46 = vsub.s32 0, %v1243_v25  ;;  %v761_v27 = vmul.f32 1.442695, %v741_v39  ;;  %v787_v20 = vmul.f32 %v1352_v12, %v1254_v29 }
 0x499   :  { %1122 = vpow2.f32 %v753_v50  ;;  %v746_v53 = vsub.f32 %v1469_v1, %v736_v24  ;;  %v763_v52 = vmul.f32 1.442695, %v742_v26  ;;  %v791_v57 = vmul.f32 %v1354_v13, %v1254_v29 }
 0x49a   :  { %v1504_v41 = vrot.slane %v801_v38, %v1647_v46  ;;  %1124 = vpow2.f32 %v755_v47  ;;  %v747_v56 = vsub.f32 %v1461_v61, %v736_v24  ;;  %v765_v25 = vmul.f32 1.442695, %v743_v44 }
 0x49b   :  { %1126 = vpow2.f32 %v757_v54  ;;  %v748_v62 = vsub.f32 %v1467_v0, %v736_v24  ;;  %v767_v48 = vmul.f32 1.442695, %v744_v40  ;;  %v789_v12 = vmul.f32 %v1358_v15, %v1254_v29 }
 0x49c   :  { %1128 = vpow2.f32 %v759_v43  ;;  %v749_v1 = vsub.f32 %v1479_v6, %v736_v24  ;;  %v769_v49 = vmul.f32 1.442695, %v745_v42  ;;  %v810_v13 = vadd.f32 %v1504_v41, %v787_v20  ;;  %v1648_v43 = vld [vmem:[#allocation3_spill] sm:$0xff] }
 0x49d   :  { %1130 = vpow2.f32 %v761_v27  ;;  %v750_v61 = vsub.f32 %v1485_v9, %v736_v24  ;;  %v771_v51 = vmul.f32 1.442695, %v746_v53  ;;  %v751_v0 = vsub.f32 %v1477_v5, %v736_v24  ;;  %v1649_v53 = vld [vmem:[#allocation5_spill] sm:$0xff] }
 0x49e   :  { %1132 = vpow2.f32 %v763_v52  ;;  %v773_v55 = vmul.f32 1.442695, %v747_v56  ;;  %v788_v15 = vmul.f32 %v1360_v16, %v1254_v29  ;;  %v752_v6 = vsub.f32 %v1481_v7, %v736_v24 }
 0x49f   :  { %1134 = vpow2.f32 %v765_v25  ;;  %v775_v58 = vmul.f32 1.442695, %v748_v62  ;;  %v814_v59 = vadd.f32 %v1504_v41, %v791_v57  ;;  %v790_v9 = vmul.f32 %v1366_v19, %v1254_v29  ;;  %v1650_v62 = vld [vmem:[#allocation2_spill] sm:$0xff] }
 0x4a0   :  { %1136 = vpow2.f32 %v767_v48  ;;  %v777_v60 = vmul.f32 1.442695, %v749_v1  ;;  %v808_v18 = vadd.f32 %v1504_v41, %v785_v45  ;;  %v792_v5 = vmul.f32 %v1362_v17, %v1254_v29 }
 0x4a1   :  { %1138 = vpow2.f32 %v769_v49  ;;  %v779_v63 = vmul.f32 1.442695, %v750_v61  ;;  %v809_v16 = vadd.f32 %v1504_v41, %v786_v14  ;;  %v812_v7 = vadd.f32 %v1504_v41, %v789_v12  ;;  %v1651_v61 = vld [vmem:[#allocation4_spill] sm:$0xff] }
 0x4a2   :  { %1140 = vpow2.f32 %v771_v51  ;;  %v781_v3 = vmul.f32 1.442695, %v751_v0  ;;  %v811_v8 = vadd.f32 %v1504_v41, %v788_v15  ;;  %v783_v19 = vmul.f32 1.442695, %v752_v6 }
 0x4a3   :  { %v1123_v2 = vpop.eup %1122  ;;  %1142 = vpow2.f32 %v773_v55  ;;  %v813_v21 = vadd.f32 %v1504_v41, %v790_v9  ;;  %v794_v33 = vmul.f32 %v1383_v36, %v1254_v29  ;;  %v795_v39 = vmul.f32 %v1373_v22, %v1254_v29 }
 0x4a4   :  { %v1125_v4 = vpop.eup %1124  ;;  %1144 = vpow2.f32 %v775_v58  ;;  %v824_v10 = vmul.f32 %v1123_v2, %v808_v18  ;;  %v815_v50 = vadd.f32 %v1504_v41, %v792_v5  ;;  %v796_v36 = vmul.f32 %v1379_v32, %v1254_v29 }
 0x4a5   :  { %v1127_v11 = vpop.eup %1126  ;;  %1146 = vpow2.f32 %v777_v60  ;;  %v825_v17 = vmul.f32 %v1125_v4, %v809_v16  ;;  %v816_v40 = vadd.f32 %v1504_v41, %v793_v37  ;;  %v797_v46 = vmul.f32 %v1648_v43, %v1254_v29 }
 0x4a6   :  { %v1129_v31 = vpop.eup %1128  ;;  %1148 = vpow2.f32 %v779_v63  ;;  %v826_v23 = vmul.f32 %v1127_v11, %v810_v13  ;;  %v986_v24 = vpack.c.bf16 %v824_v10, %v824_v10  ;;  %v817_v20 = vadd.f32 %v1504_v41, %v794_v33 }
 0x4a7   :  { %v1131_v30 = vpop.eup %1130  ;;  %1150 = vpow2.f32 %v781_v3  ;;  %v827_v34 = vmul.f32 %v1129_v31, %v811_v8  ;;  %v987_v35 = vpack.c.bf16 %v825_v17, %v825_v17  ;;  %v798_v52 = vmul.f32 %v1649_v53, %v1254_v29 }
 0x4a8   :  { %v1133_v38 = vpop.eup %1132  ;;  %1152 = vpow2.f32 %v783_v19  ;;  %v828_v26 = vmul.f32 %v1131_v30, %v812_v7  ;;  %v988_v44 = vpack.c.bf16 %v826_v23, %v826_v23  ;;  %905 = vst.msk [vmem:[%s1637_s11] sm:$0xf] %vm904_vm6, %v986_v24  ;;  %v818_v45 = vadd.f32 %v1504_v41, %v795_v39 }
 0x4a9   :  { %v1135_v28 = vpop.eup %1134  ;;  %v829_v47 = vmul.f32 %v1133_v38, %v813_v21  ;;  %v989_v54 = vpack.c.bf16 %v827_v34, %v827_v34  ;;  %906 = vst.msk [vmem:[%s1637_s11 + $0x4] sm:$0xf] %vm904_vm6, %v987_v35  ;;  %v799_v48 = vmul.f32 %v1650_v62, %v1254_v29  ;;  %v819_v13 = vadd.f32 %v1504_v41, %v796_v36 }
 0x4aa   :  { %v1137_v22 = vpop.eup %1136  ;;  %v830_v42 = vmul.f32 %v1135_v28, %v814_v59  ;;  %v990_v27 = vpack.c.bf16 %v828_v26, %v828_v26  ;;  %907 = vst.msk [vmem:[%s1637_s11 + $0x8] sm:$0xf] %vm904_vm6, %v988_v44  ;;  %v800_v51 = vmul.f32 %v1651_v61, %v1254_v29  ;;  %v820_v15 = vadd.f32 %v1504_v41, %v797_v46 }
 0x4ab   :  { %v1139_v32 = vpop.eup %1138  ;;  %v831_v57 = vmul.f32 %v1137_v22, %v815_v50  ;;  %v991_v56 = vpack.c.bf16 %v829_v47, %v829_v47  ;;  %908 = vst.msk [vmem:[%s1637_s11 + $0xc] sm:$0xf] %vm904_vm6, %v989_v54  ;;  %v821_v29 = vadd.f32 %v1504_v41, %v798_v52  ;;  %v822_v5 = vadd.f32 %v1504_v41, %v799_v48 }
 0x4ac   :  { %v1141_v25 = vpop.eup %1140  ;;  %v832_v12 = vmul.f32 %v1139_v32, %v816_v40  ;;  %v992_v1 = vpack.c.bf16 %v830_v42, %v830_v42  ;;  %909 = vst.msk [vmem:[%s1637_s11 + $0x10] sm:$0xf] %vm904_vm6, %v990_v27  ;;  %v823_v7 = vadd.f32 %v1504_v41, %v800_v51 }
 0x4ad   :  { %v1143_v49 = vpop.eup %1142  ;;  %v833_v14 = vmul.f32 %v1141_v25, %v817_v20  ;;  %v993_v0 = vpack.c.bf16 %v831_v57, %v831_v57  ;;  %910 = vst.msk [vmem:[%s1637_s11 + $0x14] sm:$0xf] %vm904_vm6, %v991_v56 }
 0x4ae   :  { %v1145_v55 = vpop.eup %1144  ;;  %v834_v6 = vmul.f32 %v1143_v49, %v818_v45  ;;  %v994_v58 = vpack.c.bf16 %v832_v12, %v832_v12  ;;  %911 = vst.msk [vmem:[%s1637_s11 + $0x18] sm:$0xf] %vm904_vm6, %v992_v1 }
 0x4af   :  { %v1147_v59 = vpop.eup %1146  ;;  %v835_v9 = vmul.f32 %v1145_v55, %v819_v13  ;;  %v995_v60 = vpack.c.bf16 %v833_v14, %v833_v14  ;;  %912 = vst.msk [vmem:[%s1637_s11 + $0x1c] sm:$0xf] %vm904_vm6, %v993_v0 }
 0x4b0   :  { %v1149_v18 = vpop.eup %1148  ;;  %v836_v63 = vmul.f32 %v1147_v59, %v820_v15  ;;  %v996_v2 = vpack.c.bf16 %v834_v6, %v834_v6  ;;  %913 = vst.msk [vmem:[%s1637_s11 + $0x20] sm:$0xf] %vm904_vm6, %v994_v58 }
 0x4b1   :  { %v1151_v16 = vpop.eup %1150  ;;  %v837_v3 = vmul.f32 %v1149_v18, %v821_v29  ;;  %v997_v4 = vpack.c.bf16 %v835_v9, %v835_v9  ;;  %914 = vst.msk [vmem:[%s1637_s11 + $0x24] sm:$0xf] %vm904_vm6, %v995_v60 }
 0x4b2   :  { %v1153_v8 = vpop.eup %1152  ;;  %v838_v19 = vmul.f32 %v1151_v16, %v822_v5  ;;  %v998_v10 = vpack.c.bf16 %v836_v63, %v836_v63  ;;  %915 = vst.msk [vmem:[%s1637_s11 + $0x28] sm:$0xf] %vm904_vm6, %v996_v2 }
 0x4b3   :  { %v839_v11 = vmul.f32 %v1153_v8, %v823_v7  ;;  %v999_v21 = vpack.c.bf16 %v837_v3, %v837_v3  ;;  %916 = vst.msk [vmem:[%s1637_s11 + $0x2c] sm:$0xf] %vm904_vm6, %v997_v4 }
 0x4b4   :  { %v1000_v41 = vpack.c.bf16 %v838_v19, %v838_v19  ;;  %917 = vst.msk [vmem:[%s1637_s11 + $0x30] sm:$0xf] %vm904_vm6, %v998_v10 }
 0x4b5   :  { %v1001_v17 = vpack.c.bf16 %v839_v11, %v839_v11  ;;  %918 = vst.msk [vmem:[%s1637_s11 + $0x34] sm:$0xf] %vm904_vm6, %v999_v21 }
 0x4b6   :  { %919 = vst.msk [vmem:[%s1637_s11 + $0x38] sm:$0xf] %vm904_vm6, %v1000_v41 }
 0x4b7   :  { %920 = vst.msk [vmem:[%s1637_s11 + $0x3c] sm:$0xf] %vm904_vm6, %v1001_v17 }

</bundles_post_ra>
